<compile_context>
chip_gen: v6e
topology: v6e:2x2x1
jax: 0.10.0
libtpu: 0.0.40
codegen_flags: <defaults>
</compile_context>

<pallas_src>
import functools

import jax
import jax.numpy as jnp
from jax.experimental import pallas as pl
from jax.experimental.pallas import tpu as pltpu


_VMEM_LIMIT = 40 * 1024 * 1024  # safe headroom on v5e/v6e (128 MiB) and v7x (64 MiB)


# ---------------------------------------------------------------------------
# Fused single-pass kernel (small inputs): x resident in VMEM.
# Computes per-channel mean / biased var (two-pass, numerically stable), then
# normalize + affine + LeakyReLU, all without re-reading HBM.
# ---------------------------------------------------------------------------
def _fused_kernel(x_ref, g_ref, b_ref, o_ref, mean_ref, var_ref, *,
                  eps, negative_slope, inv_count):
    xf = x_ref[...].astype(jnp.float32)                              # (N, C, S)
    s1 = jnp.sum(jnp.sum(xf, axis=2, keepdims=True), axis=0, keepdims=True)
    mean = s1 * inv_count                                            # (1, C, 1)
    d = xf - mean
    s2 = jnp.sum(jnp.sum(d * d, axis=2, keepdims=True), axis=0, keepdims=True)
    var = s2 * inv_count                                             # biased var
    scale = g_ref[...] * jax.lax.rsqrt(var + eps)                    # (1, C, 1)
    y = d * scale + b_ref[...]
    o_ref[...] = jnp.maximum(y, y * negative_slope).astype(o_ref.dtype)
    mean_ref[...] = mean
    var_ref[...] = var


# ---------------------------------------------------------------------------
# Pass 1 (large inputs): per-row (= per (n, c)) sum / sum-of-squares over the
# S (lane) grid axis. Lane-wide (br, 128) f32 scratch accumulators updated by
# aligned 128-wide VALU adds; the cross-lane reduce + (br, 1) store happen only
# on the last S step. The ragged-tail mask (if any) only runs on the last tile.
# ---------------------------------------------------------------------------
def _stats_kernel(x_ref, rsum_ref, rsq_ref, acc_s_ref, acc_q_ref, *,
                  grid_s, ts, rem):
    j = pl.program_id(1)

    @pl.when(j == 0)
    def _init():
        acc_s_ref[...] = jnp.zeros_like(acc_s_ref)
        acc_q_ref[...] = jnp.zeros_like(acc_q_ref)

    xb = x_ref[...].astype(jnp.float32)
    n_sub = ts // 128

    def _accumulate(xt):
        s = acc_s_ref[...]
        q = acc_q_ref[...]
        for m in range(n_sub):
            sl = xt[:, m * 128:(m + 1) * 128]
            s = s + sl
            q = q + sl * sl
        acc_s_ref[...] = s
        acc_q_ref[...] = q

    if rem == 0:
        # S is an exact multiple of ts: fast path on every step, no mask ever.
        _accumulate(xb)
    else:
        @pl.when(j < grid_s - 1)
        def _fast():
            _accumulate(xb)

        @pl.when(j == grid_s - 1)
        def _masked():
            col = jax.lax.broadcasted_iota(jnp.int32, xb.shape, 1)
            _accumulate(jnp.where(col < rem, xb, 0.0))

    @pl.when(j == grid_s - 1)
    def _finalize():
        rsum_ref[...] = jnp.sum(acc_s_ref[...], axis=1, keepdims=True)
        rsq_ref[...] = jnp.sum(acc_q_ref[...], axis=1, keepdims=True)


def _stats_kernel_single(x_ref, rsum_ref, rsq_ref):
    # Single S-step variant (S fits in one tile, possibly not a multiple of 128).
    xb = x_ref[...].astype(jnp.float32)
    rsum_ref[...] = jnp.sum(xb, axis=1, keepdims=True)
    rsq_ref[...] = jnp.sum(xb * xb, axis=1, keepdims=True)


# ---------------------------------------------------------------------------
# Pass 2 (large inputs): fused normalize + affine + LeakyReLU.
# scale/shift are per-row (per (n, c)) columns of shape (rows, 1) broadcast
# across the lane-dense (rows, ts) tile.
# ---------------------------------------------------------------------------
def _norm_act_kernel(scale_ref, shift_ref, x_ref, o_ref, *, negative_slope):
    y = x_ref[...].astype(jnp.float32) * scale_ref[...] + shift_ref[...]
    o_ref[...] = jnp.maximum(y, y * negative_slope).astype(o_ref.dtype)


def _pick_col_tile(S, block_cols):
    """Lane-dense S tile; prefer an exact 128-multiple divisor of S so the stats
    kernel never masks. Only accept divisors >= block_cols/2 to keep tiles large."""
    if S <= block_cols:
        return S
    full = max(128, (block_cols // 128) * 128)
    t = full
    while t >= max(128, full // 2):
        if S % t == 0:
            return t
        t -= 128
    return full  # ragged tail: masked only on the last S tile


def regular_batch_norm3d(
    x,
    gamma,
    beta,
    *,
    eps: float = 1e-5,
    negative_slope: float = 0.01,
    momentum: float = 0.1,
    running_mean=None,
    running_var=None,
    block_rows: int = 256,
    block_cols: int = 4096,
    fused_bytes_limit: int = 4 * 1024 * 1024,
):
    """Forward of RegularBatchNorm3d. x is NCDHW. Returns (y, new_rm, new_rv)."""
    N, C, D, H, W = x.shape
    S = D * H * W
    NC = N * C
    count = float(N * S)
    itemsize = jnp.dtype(x.dtype).itemsize
    block_rows = max(8, block_rows)

    use_fused = (NC * S * 4) <= fused_bytes_limit

    if use_fused:
        # ---- single-pass VMEM-resident path ------------------------------
        x3 = x.reshape(N, C, S)                       # free view of NCDHW
        g3 = gamma.astype(jnp.float32).reshape(1, C, 1)
        b3 = beta.astype(jnp.float32).reshape(1, C, 1)
        y3, mean3, var3 = pl.pallas_call(
            functools.partial(_fused_kernel, eps=float(eps),
                              negative_slope=float(negative_slope),
                              inv_count=1.0 / count),
            out_shape=(jax.ShapeDtypeStruct((N, C, S), x.dtype),
                       jax.ShapeDtypeStruct((1, C, 1), jnp.float32),
                       jax.ShapeDtypeStruct((1, C, 1), jnp.float32)),
            grid=(1,),
            in_specs=[pl.BlockSpec((N, C, S), lambda i: (0, 0, 0)),
                      pl.BlockSpec((1, C, 1), lambda i: (0, 0, 0)),
                      pl.BlockSpec((1, C, 1), lambda i: (0, 0, 0))],
            out_specs=(pl.BlockSpec((N, C, S), lambda i: (0, 0, 0)),
                       pl.BlockSpec((1, C, 1), lambda i: (0, 0, 0)),
                       pl.BlockSpec((1, C, 1), lambda i: (0, 0, 0))),
            compiler_params=pltpu.CompilerParams(
                dimension_semantics=("arbitrary",),
                vmem_limit_bytes=_VMEM_LIMIT),
            cost_estimate=pl.CostEstimate(
                flops=10 * N * C * S, transcendentals=0,
                bytes_accessed=2 * N * C * S * itemsize),
        )(x3, g3, b3)
        mean = mean3.reshape(C)
        var = var3.reshape(C)
        y = y3.reshape(N, C, D, H, W)
    else:
        # ---- two-pass HBM-streaming path ----------------------------------
        x2 = x.reshape(NC, S)                         # free view of NCDHW

        # Sublane-dense rows; lane-dense columns.
        if NC >= 8:
            br = min(block_rows, (NC // 8) * 8)
        else:
            br = NC
        grid_r = pl.cdiv(NC, br)
        if grid_r == 1 and NC >= 16:
            # v7x megacore: give the 'parallel' row axis at least two steps.
            br = ((pl.cdiv(NC, 2) + 7) // 8) * 8
            grid_r = pl.cdiv(NC, br)

        ts = _pick_col_tile(S, block_cols)
        grid_s = pl.cdiv(S, ts)
        rem = S % ts  # 0 when S tiles evenly

        stats_cost = pl.CostEstimate(flops=3 * NC * S, transcendentals=0,
                                     bytes_accessed=NC * S * itemsize + 8 * NC)
        if grid_s == 1:
            rsum, rsq = pl.pallas_call(
                _stats_kernel_single,
                out_shape=(jax.ShapeDtypeStruct((NC, 1), jnp.float32),
                           jax.ShapeDtypeStruct((NC, 1), jnp.float32)),
                grid=(grid_r,),
                in_specs=[pl.BlockSpec((br, S), lambda i: (i, 0))],
                out_specs=(pl.BlockSpec((br, 1), lambda i: (i, 0)),
                           pl.BlockSpec((br, 1), lambda i: (i, 0))),
                compiler_params=pltpu.CompilerParams(
                    dimension_semantics=("parallel",),
                    vmem_limit_bytes=_VMEM_LIMIT),
                cost_estimate=stats_cost,
            )(x2)
        else:
            rsum, rsq = pl.pallas_call(
                functools.partial(_stats_kernel, grid_s=grid_s, ts=ts, rem=rem),
                out_shape=(jax.ShapeDtypeStruct((NC, 1), jnp.float32),
                           jax.ShapeDtypeStruct((NC, 1), jnp.float32)),
                grid=(grid_r, grid_s),
                in_specs=[pl.BlockSpec((br, ts), lambda i, j: (i, j))],
                out_specs=(pl.BlockSpec((br, 1), lambda i, j: (i, 0)),
                           pl.BlockSpec((br, 1), lambda i, j: (i, 0))),
                scratch_shapes=[pltpu.VMEM((br, 128), jnp.float32),
                                pltpu.VMEM((br, 128), jnp.float32)],
                compiler_params=pltpu.CompilerParams(
                    dimension_semantics=("parallel", "arbitrary"),
                    vmem_limit_bytes=_VMEM_LIMIT),
                cost_estimate=stats_cost,
            )(x2)

        # Tiny per-channel glue (C / N*C element ops only).
        ch_sum = jnp.sum(rsum.reshape(N, C), axis=0)
        ch_sq = jnp.sum(rsq.reshape(N, C), axis=0)
        mean = ch_sum / count
        # TODO(synk): E[x^2]-E[x]^2 in f32 can cancel when |mean| >> std; the fused
        # small-input path uses a true two-pass variance instead.
        var = jnp.maximum(ch_sq / count - mean * mean, 0.0)

        scale = gamma.astype(jnp.float32) * jax.lax.rsqrt(var + jnp.float32(eps))
        shift = beta.astype(jnp.float32) - mean * scale
        # Per-channel -> per-row (row r corresponds to channel r % C).
        scale_rows = jnp.tile(scale, (N,)).reshape(NC, 1)
        shift_rows = jnp.tile(shift, (N,)).reshape(NC, 1)

        y2 = pl.pallas_call(
            functools.partial(_norm_act_kernel,
                              negative_slope=float(negative_slope)),
            out_shape=jax.ShapeDtypeStruct((NC, S), x.dtype),
            grid=(grid_r, grid_s),
            in_specs=[pl.BlockSpec((br, 1), lambda i, j: (i, 0)),
                      pl.BlockSpec((br, 1), lambda i, j: (i, 0)),
                      pl.BlockSpec((br, ts), lambda i, j: (i, j))],
            out_specs=pl.BlockSpec((br, ts), lambda i, j: (i, j)),
            compiler_params=pltpu.CompilerParams(
                dimension_semantics=("parallel", "parallel"),
                vmem_limit_bytes=_VMEM_LIMIT),
            cost_estimate=pl.CostEstimate(
                flops=4 * NC * S, transcendentals=0,
                bytes_accessed=2 * NC * S * itemsize),
        )(scale_rows, shift_rows, x2)
        y = y2.reshape(N, C, D, H, W)

    # Running-stat update (training-mode side effect; does not affect y).
    if running_mean is None:
        running_mean = jnp.zeros((C,), jnp.float32)
    if running_var is None:
        running_var = jnp.ones((C,), jnp.float32)
    bessel = count / max(count - 1.0, 1.0)
    new_rm = (1.0 - momentum) * running_mean + momentum * mean
    new_rv = (1.0 - momentum) * running_var + momentum * (var * bessel)
    return y, new_rm, new_rv


def _reference(x, gamma, beta, eps=1e-5, negative_slope=0.01):
    xf = x.astype(jnp.float32)
    mean = jnp.mean(xf, axis=(0, 2, 3, 4), keepdims=True)
    var = jnp.mean((xf - mean) ** 2, axis=(0, 2, 3, 4), keepdims=True)
    y = (xf - mean) * jax.lax.rsqrt(var + eps)
    y = y * gamma[None, :, None, None, None] + beta[None, :, None, None, None]
    return jnp.where(y >= 0.0, y, y * negative_slope).astype(x.dtype)


def _run_and_check(x, gamma, beta, **kwargs):
    y, rm, rv = regular_batch_norm3d(x, gamma, beta, **kwargs)
    y = jax.block_until_ready(y)
    ref = _reference(x, gamma, beta)
    assert y.shape == x.shape and y.dtype == x.dtype
    assert jnp.allclose(y, ref, atol=2e-4, rtol=2e-4), "output mismatch vs reference"
    return y, rm, rv


if __name__ == "__main__":
    key = jax.random.PRNGKey(0)
    k1, k2 = jax.random.split(key)

    # Config 1: small NCDHW input -> fused single-pass VMEM-resident kernel.
    N, C, D, H, W = 2, 4, 8, 16, 16
    x = jax.random.normal(k1, (N, C, D, H, W), dtype=jnp.float32)
    gamma = 1.0 + 0.1 * jnp.arange(C, dtype=jnp.float32)
    beta = 0.05 * jnp.arange(C, dtype=jnp.float32)
    y, rm, rv = _run_and_check(x, gamma, beta)

    # Running-stat check (momentum = 0.1, zero/one initial buffers).
    xf = x.astype(jnp.float32)
    bm = jnp.mean(xf, axis=(0, 2, 3, 4))
    bv = jnp.mean((xf - bm[None, :, None, None, None]) ** 2, axis=(0, 2, 3, 4))
    n_el = N * D * H * W
    exp_rm = 0.1 * bm
    exp_rv = 0.9 * 1.0 + 0.1 * bv * (n_el / (n_el - 1))
    assert jnp.allclose(rm, exp_rm, atol=1e-5, rtol=1e-4)
    assert jnp.allclose(rv, exp_rv, atol=1e-5, rtol=1e-4)

    # Config 2: force the two-pass streaming path (divisor S tile, multi-step stats).
    _run_and_check(x, gamma, beta, fused_bytes_limit=0, block_cols=512)

    # Config 3: ragged spatial extent (masked last tile) + >=2 row blocks.
    N3, C3, D3, H3, W3 = 2, 8, 2, 10, 33   # S = 660 (not a multiple of 128)
    x3 = jax.random.normal(k2, (N3, C3, D3, H3, W3), dtype=jnp.float32)
    gamma3 = 1.0 + 0.1 * jnp.arange(C3, dtype=jnp.float32)
    beta3 = 0.05 * jnp.arange(C3, dtype=jnp.float32)
    _run_and_check(x3, gamma3, beta3, fused_bytes_limit=0, block_cols=256)

    print("KERNEL_OK")
</pallas_src>

<mosaic_0001>
module attributes {stable_mosaic.version = 11 : i64} {
  func.func @_fused_kernel(%arg0: i32, %arg1: memref<2x4x2048xf32, #tpu.memory_space<vmem>>, %arg2: memref<1x4x1xf32, #tpu.memory_space<vmem>>, %arg3: memref<1x4x1xf32, #tpu.memory_space<vmem>>, %arg4: memref<2x4x2048xf32, #tpu.memory_space<vmem>>, %arg5: memref<1x4x1xf32, #tpu.memory_space<vmem>>, %arg6: memref<1x4x1xf32, #tpu.memory_space<vmem>>) attributes {dimension_semantics = [#tpu.dimension_semantics<arbitrary>], iteration_bounds = array<i64: 1>, scalar_prefetch = 0 : i64, scratch_operands = 0 : i64, tpu.core_type = #tpu.core_type<tc>, window_params = [{pipeline_mode = #tpu.pipeline_mode<synchronous>, transform_indices = @transform_0, window_bounds = array<i64: 2, 4, 2048>}, {pipeline_mode = #tpu.pipeline_mode<synchronous>, transform_indices = @transform_1, window_bounds = array<i64: 1, 4, 1>}, {pipeline_mode = #tpu.pipeline_mode<synchronous>, transform_indices = @transform_2, window_bounds = array<i64: 1, 4, 1>}, {pipeline_mode = #tpu.pipeline_mode<synchronous>, transform_indices = @transform_3, window_bounds = array<i64: 2, 4, 2048>}, {pipeline_mode = #tpu.pipeline_mode<synchronous>, transform_indices = @transform_4, window_bounds = array<i64: 1, 4, 1>}, {pipeline_mode = #tpu.pipeline_mode<synchronous>, transform_indices = @transform_5, window_bounds = array<i64: 1, 4, 1>}]} {
    %c0 = arith.constant 0 : index
    %c0_0 = arith.constant 0 : index
    %c0_1 = arith.constant 0 : index
    %0 = vector.load %arg1[%c0, %c0_0, %c0_1] : memref<2x4x2048xf32, #tpu.memory_space<vmem>>, vector<2x4x2048xf32>
    %cst = arith.constant dense<0.000000e+00> : vector<2x4xf32>
    %1 = vector.multi_reduction <add>, %0, %cst [2] : vector<2x4x2048xf32> to vector<2x4xf32>
    %2 = vector.shape_cast %1 : vector<2x4xf32> to vector<2x4x1xf32>
    %cst_2 = arith.constant dense<0.000000e+00> : vector<4x1xf32>
    %3 = vector.multi_reduction <add>, %2, %cst_2 [0] : vector<2x4x1xf32> to vector<4x1xf32>
    %4 = vector.shape_cast %3 : vector<4x1xf32> to vector<1x4x1xf32>
    %cst_3 = arith.constant 2.44140625E-4 : f32
    %5 = vector.broadcast %cst_3 : f32 to vector<1x4x1xf32>
    %6 = arith.mulf %4, %5 : vector<1x4x1xf32>
    %7 = vector.broadcast %6 : vector<1x4x1xf32> to vector<2x4x2048xf32>
    %8 = arith.subf %0, %7 : vector<2x4x2048xf32>
    %9 = arith.mulf %8, %8 : vector<2x4x2048xf32>
    %cst_4 = arith.constant dense<0.000000e+00> : vector<2x4xf32>
    %10 = vector.multi_reduction <add>, %9, %cst_4 [2] : vector<2x4x2048xf32> to vector<2x4xf32>
    %11 = vector.shape_cast %10 : vector<2x4xf32> to vector<2x4x1xf32>
    %cst_5 = arith.constant dense<0.000000e+00> : vector<4x1xf32>
    %12 = vector.multi_reduction <add>, %11, %cst_5 [0] : vector<2x4x1xf32> to vector<4x1xf32>
    %13 = vector.shape_cast %12 : vector<4x1xf32> to vector<1x4x1xf32>
    %cst_6 = arith.constant 2.44140625E-4 : f32
    %14 = vector.broadcast %cst_6 : f32 to vector<1x4x1xf32>
    %15 = arith.mulf %13, %14 : vector<1x4x1xf32>
    %c0_7 = arith.constant 0 : index
    %c0_8 = arith.constant 0 : index
    %c0_9 = arith.constant 0 : index
    %16 = vector.load %arg2[%c0_7, %c0_8, %c0_9] : memref<1x4x1xf32, #tpu.memory_space<vmem>>, vector<1x4x1xf32>
    %cst_10 = arith.constant 9.99999974E-6 : f32
    %17 = vector.broadcast %cst_10 : f32 to vector<1x4x1xf32>
    %18 = arith.addf %15, %17 : vector<1x4x1xf32>
    %19 = math.rsqrt %18 : vector<1x4x1xf32>
    %20 = arith.mulf %16, %19 : vector<1x4x1xf32>
    %21 = vector.broadcast %20 : vector<1x4x1xf32> to vector<2x4x2048xf32>
    %22 = arith.mulf %8, %21 : vector<2x4x2048xf32>
    %c0_11 = arith.constant 0 : index
    %c0_12 = arith.constant 0 : index
    %c0_13 = arith.constant 0 : index
    %23 = vector.load %arg3[%c0_11, %c0_12, %c0_13] : memref<1x4x1xf32, #tpu.memory_space<vmem>>, vector<1x4x1xf32>
    %24 = vector.broadcast %23 : vector<1x4x1xf32> to vector<2x4x2048xf32>
    %25 = arith.addf %22, %24 : vector<2x4x2048xf32>
    %cst_14 = arith.constant 0.00999999977 : f32
    %26 = vector.broadcast %cst_14 : f32 to vector<2x4x2048xf32>
    %27 = arith.mulf %25, %26 : vector<2x4x2048xf32>
    %28 = arith.maximumf %25, %27 : vector<2x4x2048xf32>
    %c0_15 = arith.constant 0 : index
    %c0_16 = arith.constant 0 : index
    %c0_17 = arith.constant 0 : index
    %29 = vector.load %arg4[%c0_15, %c0_16, %c0_17] : memref<2x4x2048xf32, #tpu.memory_space<vmem>>, vector<2x4x2048xf32>
    tpu.vector_store %arg4[%c0_15, %c0_16, %c0_17], %28 {strides = array<i32>} : memref<2x4x2048xf32, #tpu.memory_space<vmem>>, vector<2x4x2048xf32>,
    %c0_18 = arith.constant 0 : index
    %c0_19 = arith.constant 0 : index
    %c0_20 = arith.constant 0 : index
    %30 = vector.load %arg5[%c0_18, %c0_19, %c0_20] : memref<1x4x1xf32, #tpu.memory_space<vmem>>, vector<1x4x1xf32>
    tpu.vector_store %arg5[%c0_18, %c0_19, %c0_20], %6 {strides = array<i32>} : memref<1x4x1xf32, #tpu.memory_space<vmem>>, vector<1x4x1xf32>,
    %c0_21 = arith.constant 0 : index
    %c0_22 = arith.constant 0 : index
    %c0_23 = arith.constant 0 : index
    %31 = vector.load %arg6[%c0_21, %c0_22, %c0_23] : memref<1x4x1xf32, #tpu.memory_space<vmem>>, vector<1x4x1xf32>
    tpu.vector_store %arg6[%c0_21, %c0_22, %c0_23], %15 {strides = array<i32>} : memref<1x4x1xf32, #tpu.memory_space<vmem>>, vector<1x4x1xf32>,
    return
  }
  func.func @transform_0(%arg0: i32) -> (i32, i32, i32) {
    %c0_i32 = arith.constant 0 : i32
    %c0_i32_0 = arith.constant 0 : i32
    %c0_i32_1 = arith.constant 0 : i32
    %c0_i32_2 = arith.constant 0 : i32
    return %c0_i32, %c0_i32_0, %c0_i32_1 : i32, i32, i32
  }
  func.func @transform_1(%arg0: i32) -> (i32, i32, i32) {
    %c0_i32 = arith.constant 0 : i32
    %c0_i32_0 = arith.constant 0 : i32
    %c0_i32_1 = arith.constant 0 : i32
    %c0_i32_2 = arith.constant 0 : i32
    return %c0_i32, %c0_i32_0, %c0_i32_1 : i32, i32, i32
  }
  func.func @transform_2(%arg0: i32) -> (i32, i32, i32) {
    %c0_i32 = arith.constant 0 : i32
    %c0_i32_0 = arith.constant 0 : i32
    %c0_i32_1 = arith.constant 0 : i32
    %c0_i32_2 = arith.constant 0 : i32
    return %c0_i32, %c0_i32_0, %c0_i32_1 : i32, i32, i32
  }
  func.func @transform_3(%arg0: i32) -> (i32, i32, i32) {
    %c0_i32 = arith.constant 0 : i32
    %c0_i32_0 = arith.constant 0 : i32
    %c0_i32_1 = arith.constant 0 : i32
    %c0_i32_2 = arith.constant 0 : i32
    return %c0_i32, %c0_i32_0, %c0_i32_1 : i32, i32, i32
  }
  func.func @transform_4(%arg0: i32) -> (i32, i32, i32) {
    %c0_i32 = arith.constant 0 : i32
    %c0_i32_0 = arith.constant 0 : i32
    %c0_i32_1 = arith.constant 0 : i32
    %c0_i32_2 = arith.constant 0 : i32
    return %c0_i32, %c0_i32_0, %c0_i32_1 : i32, i32, i32
  }
  func.func @transform_5(%arg0: i32) -> (i32, i32, i32) {
    %c0_i32 = arith.constant 0 : i32
    %c0_i32_0 = arith.constant 0 : i32
    %c0_i32_1 = arith.constant 0 : i32
    %c0_i32_2 = arith.constant 0 : i32
    return %c0_i32, %c0_i32_0, %c0_i32_1 : i32, i32, i32
  }
}

</mosaic_0001>

<bundles_post_ra>
// kernel: tpu_custom_call.1
= control target key start
LH: loop header
LB: loop body
LE: loop exit
PB: predicated region body
PF: predicated region fallthrough
CT: control target
= control target key end

     0   :  { %11 = vsyncpa [#allocation3], 0  ;;  %s862_s0 = inlined_call_operand.hbm [shape: f32[2,4,2048], index: 0, kind: input, shape index: {}]   ;;  %s863_s1 = inlined_call_operand.vmem [shape: f32[1,4,1], index: 1, kind: input, shape index: {}]   ;;  %s864_s2 = inlined_call_operand.vmem [shape: f32[1,4,1], index: 2, kind: input, shape index: {}]   ;;  %s865_s3 = inlined_call_operand.hbm [shape: f32[2,4,2048], index: 3, kind: output, shape index: {0}]   ;;  %s866_s4 = inlined_call_operand.vmem [shape: f32[1,4,1], index: 4, kind: output, shape index: {1}]   ;;  %s867_s5 = inlined_call_operand.vmem [shape: f32[1,4,1], index: 5, kind: output, shape index: {2}]  }
   0x1   :  { %12 = vsyncpa [#allocation4], 0  ;;  %s533_s18 = smov [#allocation2]  }
   0x2   :  { %s18_s19 = sshll.u32 %s533_s18, 4  ;;  %s19_s19 = int_to_ptr.vmem [resolvable:$true] %s18_s19 }
   0x3   :  { %s497_s20 = scalar_lea.vmem %s19_s19, 2048  ;;  %p502_p1 = scmp.lt.s32.totalorder %s19_s19, %s19_s19 }
   0x4   :  { %p498_p0 = scmp.ne.s32.totalorder %s19_s19, %s497_s20  ;;  %p503_p2 = scmp.lt.s32.totalorder %s497_s20, %s497_s20 }
   0x6   :  { %p504_p3 = por %p503_p2, %p502_p1 }
   0x8   :  { %p505_p4 = pnand %p504_p3, %p498_p0 }
   0xa   :  { %508 = shalt.err (!%p505_p4)
}
   0xb   :  { %s534_s21 = smov 1024   ;;  %s535_s22 = smov 64  }
   0xc   :  { %24 = dma.hbm_to_vmem [thread:$0]  %s862_s0, 2048, %s19_s19, [#allocation3], %s534_s21, %s534_s21, %s535_s22  }
   0xd   :  { %529 = dma.done.wait [#allocation3], 2048  }
   0xe   :  { %530 = vsyncadd [#allocation3], 4294965248  ;;  %vm96_vm0 = vcmask 1043456   ;;  %v575_v0 = vld [vmem:[#allocation2] sm:$0xff]  ;;  %v577_v1 = vld [vmem:[#allocation2 + $0x8] sm:$0xff]  ;;  %vm435_vm1 = vcmask 3072  }
   0xf   :  { %v64_v2 = vcombine.high %v575_v0, %v575_v0  ;;  %v65_v3 = vcombine.high %v577_v1, %v577_v1  ;;  %v97_v4 = vsel %vm96_vm0, %v575_v0, 0.0  ;;  %v585_v5 = vld [vmem:[#allocation2 + $0x10] sm:$0xff]  ;;  %v100_v7 = vsel %vm96_vm0, %v577_v1, 0.0  ;;  %v590_v9 = vld [vmem:[#allocation2 + $0x40] sm:$0xff]  ;;  %v595_v12 = vld [vmem:[#allocation2 + $0x48] sm:$0xff] }
  0x10   :  { %v66_v10 = vcombine.high %v585_v5, %v585_v5  ;;  %v597_v13 = vld [vmem:[#allocation2 + $0x18] sm:$0xff]  ;;  %v104_v15 = vsel %vm96_vm0, %v585_v5, 0.0  ;;  %v72_v16 = vcombine.high %v590_v9, %v590_v9  ;;  %v73_v18 = vcombine.high %v595_v12, %v595_v12  ;;  %v608_v21 = vld [vmem:[#allocation2 + $0x50] sm:$0xff]  ;;  %v612_v23 = vld [vmem:[#allocation2 + $0x20] sm:$0xff] }
  0x11   :  { %v98_v6 = vsel %vm96_vm0, %v64_v2, 0.0  ;;  %v102_v11 = vsel %vm96_vm0, %v65_v3, 0.0  ;;  %v67_v19 = vcombine.high %v597_v13, %v597_v13  ;;  %v130_v22 = vsel %vm96_vm0, %v590_v9, 0.0  ;;  %v625_v34 = vld [vmem:[#allocation2 + $0x58] sm:$0xff]  ;;  %v627_v36 = vld [vmem:[#allocation2 + $0x28] sm:$0xff]  ;;  %v639_v46 = vld [vmem:[#allocation2 + $0x60] sm:$0xff] }
  0x12   :  { %v99_v8 = vadd.f32 %v98_v6, %v97_v4  ;;  %v106_v20 = vsel %vm96_vm0, %v66_v10, 0.0  ;;  %v131_v25 = vsel %vm96_vm0, %v72_v16, 0.0  ;;  %v133_v26 = vsel %vm96_vm0, %v595_v12, 0.0  ;;  %v641_v48 = vld [vmem:[#allocation2 + $0x30] sm:$0xff]  ;;  %v653_v58 = vld [vmem:[#allocation2 + $0x68] sm:$0xff]  ;;  %v655_v60 = vld [vmem:[#allocation2 + $0x38] sm:$0xff] }
  0x13   :  { %v108_v27 = vsel %vm96_vm0, %v597_v13, 0.0  ;;  %v132_v28 = vadd.f32 %v131_v25, %v130_v22  ;;  %v74_v30 = vcombine.high %v608_v21, %v608_v21  ;;  %v135_v31 = vsel %vm96_vm0, %v73_v18, 0.0  ;;  %v667_v10 = vld [vmem:[#allocation2 + $0x70] sm:$0xff] }
  0x14   :  { %v101_v14 = vadd.f32 %v100_v7, %v99_v8  ;;  %v68_v32 = vcombine.high %v612_v23, %v612_v23  ;;  %v110_v33 = vsel %vm96_vm0, %v67_v19, 0.0  ;;  %v137_v38 = vsel %vm96_vm0, %v608_v21, 0.0 }
  0x15   :  { %v134_v35 = vadd.f32 %v133_v26, %v132_v28  ;;  %v112_v39 = vsel %vm96_vm0, %v612_v23, 0.0  ;;  %v75_v42 = vcombine.high %v625_v34, %v625_v34  ;;  %v139_v43 = vsel %vm96_vm0, %v74_v30, 0.0 }
  0x16   :  { %v103_v17 = vadd.f32 %v102_v11, %v101_v14  ;;  %v69_v44 = vcombine.high %v627_v36, %v627_v36  ;;  %v114_v45 = vsel %vm96_vm0, %v68_v32, 0.0  ;;  %v141_v50 = vsel %vm96_vm0, %v625_v34, 0.0 }
  0x17   :  { %v136_v40 = vadd.f32 %v135_v31, %v134_v35  ;;  %v116_v51 = vsel %vm96_vm0, %v627_v36, 0.0  ;;  %v76_v54 = vcombine.high %v639_v46, %v639_v46  ;;  %v143_v55 = vsel %vm96_vm0, %v75_v42, 0.0 }
  0x18   :  { %v105_v24 = vadd.f32 %v104_v15, %v103_v17  ;;  %v70_v56 = vcombine.high %v641_v48, %v641_v48  ;;  %v118_v57 = vsel %vm96_vm0, %v69_v44, 0.0  ;;  %v145_v62 = vsel %vm96_vm0, %v639_v46, 0.0 }
  0x19   :  { %v138_v47 = vadd.f32 %v137_v38, %v136_v40  ;;  %v120_v63 = vsel %vm96_vm0, %v641_v48, 0.0  ;;  %v77_v4 = vcombine.high %v653_v58, %v653_v58  ;;  %v147_v6 = vsel %vm96_vm0, %v76_v54, 0.0 }
  0x1a   :  { %v107_v29 = vadd.f32 %v106_v20, %v105_v24  ;;  %v71_v7 = vcombine.high %v655_v60, %v655_v60  ;;  %v122_v8 = vsel %vm96_vm0, %v70_v56, 0.0  ;;  %v149_v15 = vsel %vm96_vm0, %v653_v58, 0.0  ;;  %v677_v24 = vld [vmem:[#allocation2 + $0x78] sm:$0xff] }
  0x1b   :  { %v140_v52 = vadd.f32 %v139_v43, %v138_v47  ;;  %v124_v16 = vsel %vm96_vm0, %v655_v60, 0.0  ;;  %v78_v19 = vcombine.high %v667_v10, %v667_v10  ;;  %v151_v20 = vsel %vm96_vm0, %v77_v4, 0.0 }
  0x1c   :  { %v109_v37 = vadd.f32 %v108_v27, %v107_v29  ;;  %v126_v22 = vsel %vm96_vm0, %v71_v7, 0.0  ;;  %v153_v27 = vsel %vm96_vm0, %v667_v10, 0.0  ;;  %v79_v30 = vcombine.high %v677_v24, %v677_v24 }
  0x1d   :  { %v142_v59 = vadd.f32 %v141_v50, %v140_v52  ;;  %v155_v31 = vsel %vm96_vm0, %v78_v19, 0.0  ;;  %v171_v43 = vlaneseq }
  0x1e   :  { %v111_v41 = vadd.f32 %v110_v33, %v109_v37  ;;  %v157_v33 = vsel %vm96_vm0, %v677_v24, 0.0  ;;  %v159_v37 = vsel %vm96_vm0, %v79_v30, 0.0 }
  0x1f   :  { %v144_v2 = vadd.f32 %v143_v55, %v142_v59 }
  0x20   :  { %v113_v49 = vadd.f32 %v112_v39, %v111_v41  ;;  %v536_v41 = vmov 839922192  }
  0x21   :  { %v146_v11 = vadd.f32 %v145_v62, %v144_v2  ;;  %v169_v42 = vunpack.c.l.s4 %v536_v41 }
  0x22   :  { %v115_v53 = vadd.f32 %v114_v45, %v113_v49  ;;  %v172_v45 = vshrl.u32 %v171_v43, 7 }
  0x23   :  { %v148_v17 = vadd.f32 %v147_v6, %v146_v11  ;;  %v170_v44 = vunpack.c.0.s8 %v169_v42 }
  0x24   :  { %v117_v61 = vadd.f32 %v116_v51, %v115_v53 }
  0x25   :  { %v150_v25 = vadd.f32 %v149_v15, %v148_v17  ;;  %v689_v51 = vsub.s32 %v170_v44, %v172_v45 }
  0x26   :  { %v119_v3 = vadd.f32 %v118_v57, %v117_v61 }
  0x27   :  { %v152_v28 = vadd.f32 %v151_v20, %v150_v25 }
  0x28   :  { %v121_v14 = vadd.f32 %v120_v63, %v119_v3 }
  0x29   :  { %v154_v32 = vadd.f32 %v153_v27, %v152_v28 }
  0x2a   :  { %v123_v18 = vadd.f32 %v122_v8, %v121_v14 }
  0x2b   :  { %v156_v35 = vadd.f32 %v155_v31, %v154_v32 }
  0x2c   :  { %v125_v26 = vadd.f32 %v124_v16, %v123_v18 }
  0x2d   :  { %v158_v38 = vadd.f32 %v157_v33, %v156_v35 }
  0x2e   :  { %v127_v29 = vadd.f32 %v126_v22, %v125_v26 }
  0x2f   :  { %v160_v39 = vadd.f32 %v159_v37, %v158_v38 }
  0x30   :  { %128 = vadd.xlane.f32.xlu0 %v127_v29 }
  0x34   :  { %161 = vadd.xlane.f32.xlu0 %v160_v39 }
  0xb9   :  { %v129_v40 = vpop.xlane.xlu0 %128 }
  0xba   :  { %v163_v49 = vsel %vm96_vm0, %v129_v40, 0.0 }
  0xbd   :  { %v162_v47 = vpop.xlane.xlu0 %161 }
  0xbe   :  { %v164_v50 = vsel %vm96_vm0, %v162_v47, 0.0 }
  0xbf   :  { %v165_v52 = vadd.f32 %v164_v50, %v163_v49 }
  0xc1   :  { %v166_v53 = vmul.f32 0.00024414063, %v165_v52 }
  0xc3   :  { %v692_v54 = vrot.slane %v166_v53, %v689_v51  ;;  %436 = vst.msk [vmem:[%s866_s4] sm:$0xf] %vm435_vm1, %v166_v53 }
  0xc5   :  { %v700_v55 = vsub.f32 %v575_v0, %v692_v54  ;;  %v704_v56 = vsub.f32 %v577_v1, %v692_v54  ;;  %v708_v57 = vsub.f32 %v585_v5, %v692_v54  ;;  %v716_v63 = vsub.f32 %v597_v13, %v692_v54 }
  0xc6   :  { %v725_v6 = vsub.f32 %v612_v23, %v692_v54  ;;  %v732_v14 = vsub.f32 %v590_v9, %v692_v54  ;;  %v736_v15 = vsub.f32 %v595_v12, %v692_v54  ;;  %v741_v23 = vsub.f32 %v608_v21, %v692_v54 }
  0xc7   :  { %v192_v59 = vmul.f32 %v700_v55, %v700_v55  ;;  %v193_v61 = vmul.f32 %v704_v56, %v704_v56  ;;  %v194_v0 = vmul.f32 %v708_v57, %v708_v57  ;;  %v195_v7 = vmul.f32 %v716_v63, %v716_v63 }
  0xc8   :  { %v200_v18 = vmul.f32 %v732_v14, %v732_v14  ;;  %v201_v20 = vmul.f32 %v736_v15, %v736_v15  ;;  %v749_v9 = vsub.f32 %v627_v36, %v692_v54  ;;  %v196_v12 = vmul.f32 %v725_v6, %v725_v6 }
  0xc9   :  { %v224_v62 = vcombine.high %v192_v59, %v192_v59  ;;  %v225_v1 = vcombine.high %v193_v61, %v193_v61  ;;  %v256_v2 = vsel %vm96_vm0, %v192_v59, 0.0  ;;  %v259_v4 = vsel %vm96_vm0, %v193_v61, 0.0 }
  0xca   :  { %v226_v8 = vcombine.high %v194_v0, %v194_v0  ;;  %v263_v17 = vsel %vm96_vm0, %v194_v0, 0.0  ;;  %v227_v22 = vcombine.high %v195_v7, %v195_v7  ;;  %v232_v21 = vcombine.high %v200_v18, %v200_v18 }
  0xcb   :  { %v257_v5 = vsel %vm96_vm0, %v224_v62, 0.0  ;;  %v261_v11 = vsel %vm96_vm0, %v225_v1, 0.0  ;;  %v756_v27 = vsub.f32 %v641_v48, %v692_v54  ;;  %v267_v28 = vsel %vm96_vm0, %v195_v7, 0.0 }
  0xcc   :  { %v258_v3 = vadd.f32 %v257_v5, %v256_v2  ;;  %v265_v25 = vsel %vm96_vm0, %v226_v8, 0.0  ;;  %v761_v29 = vsub.f32 %v625_v34, %v692_v54  ;;  %v202_v36 = vmul.f32 %v741_v23, %v741_v23 }
  0xcd   :  { %v233_v31 = vcombine.high %v201_v20, %v201_v20  ;;  %v289_v32 = vsel %vm96_vm0, %v200_v18, 0.0  ;;  %v290_v33 = vsel %vm96_vm0, %v232_v21, 0.0  ;;  %v197_v35 = vmul.f32 %v749_v9, %v749_v9 }
  0xce   :  { %v260_v13 = vadd.f32 %v259_v4, %v258_v3  ;;  %v228_v48 = vcombine.high %v196_v12, %v196_v12  ;;  %v269_v37 = vsel %vm96_vm0, %v227_v22, 0.0  ;;  %v291_v38 = vadd.f32 %v290_v33, %v289_v32 }
  0xcf   :  { %v292_v34 = vsel %vm96_vm0, %v201_v20, 0.0  ;;  %v773_v40 = vsub.f32 %v655_v60, %v692_v54  ;;  %v271_v41 = vsel %vm96_vm0, %v196_v12, 0.0  ;;  %v778_v42 = vsub.f32 %v639_v46, %v692_v54 }
  0xd0   :  { %v262_v16 = vadd.f32 %v261_v11, %v260_v13  ;;  %v293_v43 = vadd.f32 %v292_v34, %v291_v38  ;;  %v203_v45 = vmul.f32 %v761_v29, %v761_v29  ;;  %v234_v47 = vcombine.high %v202_v36, %v202_v36 }
  0xd1   :  { %v294_v49 = vsel %vm96_vm0, %v233_v31, 0.0  ;;  %v198_v50 = vmul.f32 %v756_v27, %v756_v27  ;;  %v229_v52 = vcombine.high %v197_v35, %v197_v35  ;;  %v273_v60 = vsel %vm96_vm0, %v228_v48, 0.0 }
  0xd2   :  { %v264_v19 = vadd.f32 %v263_v17, %v262_v16  ;;  %v295_v53 = vadd.f32 %v294_v49, %v293_v43  ;;  %v296_v61 = vsel %vm96_vm0, %v202_v36, 0.0  ;;  %v275_v46 = vsel %vm96_vm0, %v197_v35, 0.0 }
  0xd3   :  { %v790_v62 = vsub.f32 %v653_v58, %v692_v54  ;;  %v204_v2 = vmul.f32 %v778_v42, %v778_v42  ;;  %v235_v5 = vcombine.high %v203_v45, %v203_v45  ;;  %v298_v3 = vsel %vm96_vm0, %v234_v47, 0.0 }
  0xd4   :  { %v266_v26 = vadd.f32 %v265_v25, %v264_v19  ;;  %v297_v0 = vadd.f32 %v296_v61, %v295_v53  ;;  %v199_v4 = vmul.f32 %v773_v40, %v773_v40  ;;  %v230_v7 = vcombine.high %v198_v50, %v198_v50 }
  0xd5   :  { %v277_v13 = vsel %vm96_vm0, %v229_v52, 0.0  ;;  %v300_v16 = vsel %vm96_vm0, %v203_v45, 0.0  ;;  %v279_v58 = vsel %vm96_vm0, %v198_v50, 0.0  ;;  %v802_v17 = vsub.f32 %v667_v10, %v692_v54 }
  0xd6   :  { %v268_v30 = vadd.f32 %v267_v28, %v266_v26  ;;  %v299_v8 = vadd.f32 %v298_v3, %v297_v0  ;;  %v205_v20 = vmul.f32 %v790_v62, %v790_v62  ;;  %v236_v12 = vcombine.high %v204_v2, %v204_v2  ;;  %v358_v0 = vld [vmem:[%s864_s2] sm:$0xf] }
  0xd7   :  { %v302_v22 = vsel %vm96_vm0, %v235_v5, 0.0  ;;  %v231_v25 = vcombine.high %v199_v4, %v199_v4  ;;  %v281_v26 = vsel %vm96_vm0, %v230_v7, 0.0  ;;  %v304_v36 = vsel %vm96_vm0, %v204_v2, 0.0 }
  0xd8   :  { %v270_v39 = vadd.f32 %v269_v37, %v268_v30  ;;  %v301_v18 = vadd.f32 %v300_v16, %v299_v8  ;;  %v283_v30 = vsel %vm96_vm0, %v199_v4, 0.0  ;;  %v812_v10 = vsub.f32 %v677_v24, %v692_v54  ;;  %v326_v8 = vld [vmem:[%s863_s1] sm:$0xf]  ;;  %s538_s1 = smov [#allocation5]  }
  0xd9   :  { %v206_v33 = vmul.f32 %v802_v17, %v802_v17  ;;  %v237_v35 = vcombine.high %v205_v20, %v205_v20  ;;  %v306_v48 = vsel %vm96_vm0, %v236_v12, 0.0  ;;  %v285_v37 = vsel %vm96_vm0, %v231_v25, 0.0  ;;  %s443_s2 = sshll.u32 %s538_s1, 4  ;;  %s444_s2 = int_to_ptr.vmem [resolvable:$true] %s443_s2 }
  0xda   :  { %v272_v44 = vadd.f32 %v271_v41, %v270_v39  ;;  %v303_v21 = vadd.f32 %v302_v22, %v301_v18  ;;  %v308_v34 = vsel %vm96_vm0, %v205_v20, 0.0  ;;  %v207_v24 = vmul.f32 %v812_v10, %v812_v10  ;;  %p514_p6 = scmp.lt.s32.totalorder %s444_s2, %s444_s2 }
  0xdb   :  { %v238_v54 = vcombine.high %v206_v33, %v206_v33  ;;  %v310_v43 = vsel %vm96_vm0, %v237_v35, 0.0  ;;  %v312_v45 = vsel %vm96_vm0, %v206_v33, 0.0 }
  0xdc   :  { %v274_v59 = vadd.f32 %v273_v60, %v272_v44  ;;  %v305_v31 = vadd.f32 %v304_v36, %v303_v21  ;;  %v239_v49 = vcombine.high %v207_v24, %v207_v24  ;;  %v316_v60 = vsel %vm96_vm0, %v207_v24, 0.0 }
  0xdd   :  { %v314_v50 = vsel %vm96_vm0, %v238_v54, 0.0 }
  0xde   :  { %v276_v1 = vadd.f32 %v275_v46, %v274_v59  ;;  %v307_v38 = vadd.f32 %v306_v48, %v305_v31  ;;  %v318_v59 = vsel %vm96_vm0, %v239_v49, 0.0  ;;  %v537_v46 = vmov 0  }
  0xdf   :  { %469 = vset.pattern.permute.xlu0 %v537_v46  ;;  %470 = vset.pattern.permute.xlu1 %v537_v46 }
  0xe0   :  { %v278_v11 = vadd.f32 %v277_v13, %v276_v1  ;;  %v309_v41 = vadd.f32 %v308_v34, %v307_v38 }
  0xe2   :  { %v280_v19 = vadd.f32 %v279_v58, %v278_v11  ;;  %v311_v44 = vadd.f32 %v310_v43, %v309_v41 }
  0xe4   :  { %v282_v28 = vadd.f32 %v281_v26, %v280_v19  ;;  %v313_v47 = vadd.f32 %v312_v45, %v311_v44 }
  0xe6   :  { %v284_v32 = vadd.f32 %v283_v30, %v282_v28  ;;  %v315_v52 = vadd.f32 %v314_v50, %v313_v47 }
  0xe8   :  { %v286_v39 = vadd.f32 %v285_v37, %v284_v32  ;;  %v317_v53 = vadd.f32 %v316_v60, %v315_v52 }
  0xea   :  { %287 = vadd.xlane.f32.xlu1 %v286_v39  ;;  %v319_v61 = vadd.f32 %v318_v59, %v317_v53 }
  0xee   :  { %320 = vadd.xlane.f32.xlu1 %v319_v61 }
  0xff   :  { %361 = vperm.xlu1 %470, %v358_v0  }
 0x173   :  { %v288_v1 = vpop.xlane.xlu1 %287 }
 0x174   :  { %v322_v5 = vsel %vm96_vm0, %v288_v1, 0.0 }
 0x177   :  { %v321_v2 = vpop.xlane.xlu1 %320 }
 0x178   :  { %v323_v3 = vsel %vm96_vm0, %v321_v2, 0.0 }
 0x179   :  { %v324_v4 = vadd.f32 %v323_v3, %v322_v5 }
 0x17b   :  { %v325_v7 = vmul.f32 0.00024414063, %v324_v4  ;;  %v362_v18 = vpop.permute.xlu1 %361 }
 0x17c   :  { %v369_v20 = vrot.slane %v362_v18, %v689_v51 }
 0x17d   :  { %v327_v13 = vadd.f32 1e-05, %v325_v7  ;;  %437 = vst.msk [vmem:[%s867_s5] sm:$0xf] %vm435_vm1, %v325_v7  ;;  %s509_s5 = scalar_lea.vmem %s444_s2, 2048 }
 0x17e   :  { %p510_p5 = scmp.ne.s32.totalorder %s444_s2, %s509_s5  ;;  %p515_p7 = scmp.lt.s32.totalorder %s509_s5, %s509_s5 }
 0x17f   :  { %487 = vrsqrt.f32 %v327_v13 }
 0x180   :  { %p516_p8 = por %p515_p7, %p514_p6 }
 0x182   :  { %p517_p9 = pnand %p516_p8, %p510_p5 }
 0x18c   :  { %v488_v11 = vpop.eup %487 }
 0x18d   :  { %v329_v16 = vmul.f32 %v488_v11, %v326_v8 }
 0x18f   :  { %332 = vperm.xlu0 %469, %v329_v16  }
 0x20a   :  { %v333_v58 = vpop.permute.xlu0 %332 }
 0x20b   :  { %v340_v19 = vrot.slane %v333_v58, %v689_v51 }
 0x20d   :  { %v342_v12 = vmul.f32 %v340_v19, %v700_v55  ;;  %v343_v22 = vmul.f32 %v340_v19, %v704_v56  ;;  %v344_v25 = vmul.f32 %v340_v19, %v708_v57  ;;  %v345_v26 = vmul.f32 %v340_v19, %v716_v63 }
 0x20e   :  { %v346_v21 = vmul.f32 %v340_v19, %v725_v6  ;;  %v347_v28 = vmul.f32 %v340_v19, %v749_v9  ;;  %v348_v36 = vmul.f32 %v340_v19, %v756_v27  ;;  %v349_v30 = vmul.f32 %v340_v19, %v773_v40 }
 0x20f   :  { %v350_v31 = vmul.f32 %v340_v19, %v732_v14  ;;  %v351_v51 = vmul.f32 %v340_v19, %v736_v15  ;;  %v352_v55 = vmul.f32 %v340_v19, %v741_v23  ;;  %v353_v56 = vmul.f32 %v340_v19, %v761_v29 }
 0x210   :  { %v354_v57 = vmul.f32 %v340_v19, %v778_v42  ;;  %v355_v63 = vmul.f32 %v340_v19, %v790_v62  ;;  %v356_v6 = vmul.f32 %v340_v19, %v802_v17  ;;  %v371_v32 = vadd.f32 %v369_v20, %v342_v12 }
 0x211   :  { %v372_v9 = vadd.f32 %v369_v20, %v343_v22  ;;  %v373_v33 = vadd.f32 %v369_v20, %v344_v25  ;;  %v357_v27 = vmul.f32 %v340_v19, %v812_v10  ;;  %v374_v40 = vadd.f32 %v369_v20, %v345_v26 }
 0x212   :  { %v375_v35 = vadd.f32 %v369_v20, %v346_v21  ;;  %v376_v14 = vadd.f32 %v369_v20, %v347_v28  ;;  %v377_v48 = vadd.f32 %v369_v20, %v348_v36  ;;  %v378_v15 = vadd.f32 %v369_v20, %v349_v30 }
 0x213   :  { %v379_v37 = vadd.f32 %v369_v20, %v350_v31  ;;  %v380_v23 = vadd.f32 %v369_v20, %v351_v51  ;;  %v381_v38 = vadd.f32 %v369_v20, %v352_v55  ;;  %v382_v29 = vadd.f32 %v369_v20, %v353_v56 }
 0x214   :  { %v383_v39 = vadd.f32 %v369_v20, %v354_v57  ;;  %v384_v42 = vadd.f32 %v369_v20, %v355_v63  ;;  %v385_v34 = vadd.f32 %v369_v20, %v356_v6  ;;  %v387_v62 = vmul.f32 0.01, %v371_v32 }
 0x215   :  { %v388_v41 = vmul.f32 0.01, %v372_v9  ;;  %v389_v17 = vmul.f32 0.01, %v373_v33  ;;  %v386_v24 = vadd.f32 %v369_v20, %v357_v27  ;;  %v390_v54 = vmul.f32 0.01, %v374_v40 }
 0x216   :  { %v391_v43 = vmul.f32 0.01, %v375_v35  ;;  %v392_v44 = vmul.f32 0.01, %v376_v14  ;;  %v393_v10 = vmul.f32 0.01, %v377_v48  ;;  %v403_v49 = vmax.f32 %v371_v32, %v387_v62 }
 0x217   :  { %v394_v45 = vmul.f32 0.01, %v378_v15  ;;  %v395_v47 = vmul.f32 0.01, %v379_v37  ;;  %v396_v50 = vmul.f32 0.01, %v380_v23  ;;  %v404_v53 = vmax.f32 %v372_v9, %v388_v41 }
 0x218   :  { %v397_v52 = vmul.f32 0.01, %v381_v38  ;;  %v398_v60 = vmul.f32 0.01, %v382_v29  ;;  %v399_v59 = vmul.f32 0.01, %v383_v39  ;;  %v405_v0 = vmax.f32 %v373_v33, %v389_v17 }
 0x219   :  { %v400_v61 = vmul.f32 0.01, %v384_v42  ;;  %v401_v46 = vmul.f32 0.01, %v385_v34  ;;  %419 = vst [vmem:[#allocation5] sm:$0xff] %v403_v49  ;;  %v406_v2 = vmax.f32 %v374_v40, %v390_v54  ;;  %v407_v5 = vmax.f32 %v375_v35, %v391_v43  ;;  %420 = vst [vmem:[#allocation5 + $0x8] sm:$0xff] %v404_v53 }
 0x21a   :  { %v402_v1 = vmul.f32 0.01, %v386_v24  ;;  %v408_v3 = vmax.f32 %v376_v14, %v392_v44  ;;  %v409_v4 = vmax.f32 %v377_v48, %v393_v10  ;;  %v410_v7 = vmax.f32 %v378_v15, %v394_v45  ;;  %421 = vst [vmem:[#allocation5 + $0x10] sm:$0xff] %v405_v0 }
 0x21b   :  { %v411_v13 = vmax.f32 %v379_v37, %v395_v47  ;;  %v412_v8 = vmax.f32 %v380_v23, %v396_v50  ;;  %v413_v11 = vmax.f32 %v381_v38, %v397_v52  ;;  %v414_v16 = vmax.f32 %v382_v29, %v398_v60  ;;  %422 = vst [vmem:[#allocation5 + $0x18] sm:$0xff] %v406_v2 }
 0x21c   :  { %v415_v58 = vmax.f32 %v383_v39, %v399_v59  ;;  %v416_v18 = vmax.f32 %v384_v42, %v400_v61  ;;  %423 = vst [vmem:[#allocation5 + $0x20] sm:$0xff] %v407_v5  ;;  %424 = vst [vmem:[#allocation5 + $0x28] sm:$0xff] %v408_v3  ;;  %v417_v19 = vmax.f32 %v385_v34, %v401_v46 }
 0x21d   :  { %v418_v20 = vmax.f32 %v386_v24, %v402_v1  ;;  %425 = vst [vmem:[#allocation5 + $0x30] sm:$0xff] %v409_v4  ;;  %426 = vst [vmem:[#allocation5 + $0x38] sm:$0xff] %v410_v7 }
 0x21e   :  { %427 = vst [vmem:[#allocation5 + $0x40] sm:$0xff] %v411_v13  ;;  %428 = vst [vmem:[#allocation5 + $0x48] sm:$0xff] %v412_v8 }
 0x21f   :  { %429 = vst [vmem:[#allocation5 + $0x50] sm:$0xff] %v413_v11  ;;  %430 = vst [vmem:[#allocation5 + $0x58] sm:$0xff] %v414_v16 }
 0x220   :  { %431 = vst [vmem:[#allocation5 + $0x60] sm:$0xff] %v415_v58  ;;  %432 = vst [vmem:[#allocation5 + $0x68] sm:$0xff] %v416_v18 }
 0x221   :  { %433 = vst [vmem:[#allocation5 + $0x70] sm:$0xff] %v417_v19  ;;  %434 = vst [vmem:[#allocation5 + $0x78] sm:$0xff] %v418_v20 }
 0x222   :  { %520 = shalt.err (!%p517_p9)
}
 0x223   :  { %449 = dma.vmem_to_hbm [thread:$0]  %s444_s2, 2048, %s865_s3, [#allocation4], %s534_s21, %s534_s21, %s535_s22  }
 0x224   :  { %531 = dma.done.wait [#allocation4], 2048  }
 0x225   :  { %532 = vsyncadd [#allocation4], 4294965248 }
 0x226   :  { %461 = vsyncpa [#allocation3], 1 }
 0x227   :  { %462 = vsyncpa [#allocation4], 1 }

</bundles_post_ra>
